<compile_context>
chip_gen: v7x
topology: tpu7x:2x2x1
jax: 0.10.0
libtpu: 0.0.40
codegen_flags: <defaults>
</compile_context>

<pallas_src>
import functools

import jax
import jax.numpy as jnp
from jax.experimental import pallas as pl
from jax.experimental.pallas import tpu as pltpu

K1 = 3            # first Conv1d kernel size
K2 = 5            # second Conv1d kernel size
NOUT = 3          # Linear output features
LANES = 128       # lane-major padded width (one full vreg of lanes)

# Static column offsets inside the packed parameter slab (OC rows x PW cols).
W1_OFF = 0                       # w1            (OC, 3)
B1_OFF = W1_OFF + K1             # b1            (OC, 1)
W2_OFF = B1_OFF + 1              # w2            (OC, 5)
B2_OFF = W2_OFF + K2             # b2            (OC, 1)
WFC1_OFF = B2_OFF + 1            # wfc[:, :OC].T (OC, 3)
WFC2_OFF = WFC1_OFF + NOUT       # wfc[:, OC:].T (OC, 3)
BFC_OFF = WFC2_OFF + NOUT        # bfc in row 0  (1, 3)
PW = BFC_OFF + NOUT              # = 19 columns total


def cnn_kernel(x_ref, p_ref, out_ref, *, L):
    """x_ref: (1, LANES) zero-padded row; p_ref: (OC, PW) slab; out_ref: (1, NOUT)."""
    OC = p_ref.shape[0]
    x_row = x_ref[...]                                            # (1, LANES)

    # Hoisted index masks (shared across both branches / all taps).
    lane = jax.lax.broadcasted_iota(jnp.int32, (1, LANES), 1)     # lane index row
    sub = jax.lax.broadcasted_iota(jnp.int32, (OC, LANES), 0)
    lane2 = jax.lax.broadcasted_iota(jnp.int32, (OC, LANES), 1)
    eye = sub == lane2                                            # 8x8 transpose mask

    def conv_relu(row, w_off, b_off, ksz):
        # Conv1d(1, OC, ksz, padding='same') + ReLU on a zero-padded lane-major row.
        # Rolls wrap only zeros into valid lanes, so padding is handled for free.
        half = ksz // 2
        acc = p_ref[:, w_off + half:w_off + half + 1] * row       # center tap (no roll)
        for k in range(ksz):                                      # static unroll
            off = k - half
            if off == 0:
                continue
            shifted = pltpu.roll(row, shift=(-off) % LANES, axis=1)   # v[i] = row[i+off]
            acc = acc + p_ref[:, w_off + k:w_off + k + 1] * shifted
        return jnp.maximum(acc + p_ref[:, b_off:b_off + 1], 0.0)  # (OC, LANES)

    # ---- branch 1: Conv1d(1, OC, 3, 'same') + ReLU + global max pool ----
    y1 = conv_relu(x_row, W1_OFF, B1_OFF, K1)
    # Mask junk lanes (>= L) to 0 before the pool; valid relu values are >= 0 so this
    # cannot change the max.
    p1_col = jnp.max(jnp.where(lane < L, y1, 0.0), axis=1, keepdims=True)   # (OC, 1)

    # Single in-vreg 8x8 "transpose": (OC, 1) column -> zero-padded (1, LANES) row.
    p1_row = jnp.sum(jnp.where(eye, p1_col, 0.0), axis=0, keepdims=True)    # (1, LANES)

    # ---- branch 2: Conv1d(1, OC, 5, 'same') over the pooled branch-1 output ----
    y2 = conv_relu(p1_row, W2_OFF, B2_OFF, K2)
    p2_col = jnp.max(jnp.where(lane < OC, y2, 0.0), axis=1, keepdims=True)  # (OC, 1)

    # ---- fc: Linear(2*OC, 3) as ONE fused cross-sublane reduce ----
    fc = jnp.sum(p1_col * p_ref[:, WFC1_OFF:WFC1_OFF + NOUT]
                 + p2_col * p_ref[:, WFC2_OFF:WFC2_OFF + NOUT],
                 axis=0, keepdims=True)                                      # (1, NOUT)
    out_ref[...] = fc + p_ref[0:1, BFC_OFF:BFC_OFF + NOUT]


def prepare_params(params):
    """One-time packing of all parameters into a single (OC, PW) f32 slab."""
    w1, b1 = params["w1"], params["b1"]        # (OC, 3), (OC,)
    w2, b2 = params["w2"], params["b2"]        # (OC, 5), (OC,)
    wfc, bfc = params["wfc"], params["bfc"]    # (NOUT, 2*OC), (NOUT,)
    OC = w1.shape[0]
    assert OC <= LANES - (K2 // 2)
    slab = jnp.zeros((OC, PW), jnp.float32)
    slab = slab.at[:, W1_OFF:W1_OFF + K1].set(w1.astype(jnp.float32))
    slab = slab.at[:, B1_OFF].set(b1.astype(jnp.float32))
    slab = slab.at[:, W2_OFF:W2_OFF + K2].set(w2.astype(jnp.float32))
    slab = slab.at[:, B2_OFF].set(b2.astype(jnp.float32))
    slab = slab.at[:, WFC1_OFF:WFC1_OFF + NOUT].set(wfc[:, :OC].T.astype(jnp.float32))
    slab = slab.at[:, WFC2_OFF:WFC2_OFF + NOUT].set(wfc[:, OC:].T.astype(jnp.float32))
    slab = slab.at[0, BFC_OFF:BFC_OFF + NOUT].set(bfc.astype(jnp.float32))
    return slab


def prepare_input(x):
    """One-time producer-side relayout: (L, 1) input -> zero-padded (1, LANES) f32 row."""
    L = x.shape[0]
    assert L <= LANES - (K1 // 2)
    row = jnp.zeros((1, LANES), jnp.float32)
    return row.at[0, :L].set(x[:, 0].astype(jnp.float32))


@functools.partial(jax.jit, static_argnames=("valid_len",))
def cnn_forward(x_row, packed_params, *, valid_len):
    """x_row: (1, LANES) f32 from prepare_input. Returns (NOUT,)."""
    OC = packed_params.shape[0]
    spec = pl.BlockSpec(memory_space=pltpu.MemorySpace.VMEM)
    cost = pl.CostEstimate(
        flops=2 * (OC * valid_len * K1 + OC * OC * K2 + 2 * OC * NOUT),
        transcendentals=0,
        bytes_accessed=4 * (LANES + OC * PW + NOUT),
    )
    out = pl.pallas_call(
        functools.partial(cnn_kernel, L=valid_len),
        out_shape=jax.ShapeDtypeStruct((1, NOUT), jnp.float32),
        in_specs=[spec, spec],
        out_specs=spec,
        cost_estimate=cost,
    )(x_row, packed_params)
    return out[0]                              # (NOUT,)


def init_params(key, out_channels):
    ks = jax.random.split(key, 6)

    def u(k, shape, fan_in):
        bound = 1.0 / jnp.sqrt(float(fan_in))
        return jax.random.uniform(k, shape, jnp.float32, -bound, bound)

    return dict(
        w1=u(ks[0], (out_channels, K1), K1),          # Conv1d(1, OC, 3) weight[:, 0, :]
        b1=u(ks[1], (out_channels,), K1),
        w2=u(ks[2], (out_channels, K2), K2),          # Conv1d(1, OC, 5) weight[:, 0, :]
        b2=u(ks[3], (out_channels,), K2),
        wfc=u(ks[4], (NOUT, 2 * out_channels), 2 * out_channels),   # Linear(2*OC, 3)
        bfc=u(ks[5], (NOUT,), 2 * out_channels),
    )


def ref_forward(x, params):
    """Pure-JAX replica of the PyTorch forward (including the x-reassignment quirk)."""
    w1, b1, w2, b2, wfc, bfc = (params[k] for k in ("w1", "b1", "w2", "b2", "wfc", "bfc"))
    OC = w1.shape[0]
    L = x.shape[0]
    hi = jax.lax.Precision.HIGHEST
    seq = x[:, 0]
    s1 = jnp.pad(seq, (1, 1))
    win1 = jnp.stack([s1[k:k + L] for k in range(K1)], axis=0)       # (3, L)
    y1 = jnp.dot(w1, win1, precision=hi) + b1[:, None]
    p1 = jnp.max(jax.nn.relu(y1), axis=1)                            # (OC,)
    s2 = jnp.pad(p1, (2, 2))
    win2 = jnp.stack([s2[k:k + OC] for k in range(K2)], axis=0)      # (5, OC)
    y2 = jnp.dot(w2, win2, precision=hi) + b2[:, None]
    p2 = jnp.max(jax.nn.relu(y2), axis=1)                            # (OC,)
    concat = jnp.concatenate([p1, p2])                               # (2*OC,)
    return jnp.dot(wfc, concat, precision=hi) + bfc                  # (3,)


if __name__ == "__main__":
    L, OUT_CHANNELS = 16, 8
    key = jax.random.PRNGKey(0)
    kx, kp = jax.random.split(key)
    x = jax.random.normal(kx, (L, 1), jnp.float32)
    params = init_params(kp, OUT_CHANNELS)

    packed = prepare_params(params)            # one-time parameter packing
    x_row = prepare_input(x)                   # one-time lane-major input relayout

    out = jax.block_until_ready(cnn_forward(x_row, packed, valid_len=L))
    ref = ref_forward(x, params)

    assert out.shape == (NOUT,), out.shape
    assert jnp.allclose(out, ref, rtol=1e-3, atol=1e-3), (out, ref)
    print("KERNEL_OK")
</pallas_src>

<mosaic_0001>
module attributes {stable_mosaic.version = 11 : i64} {
  func.func @cnn_kernel(%arg0: memref<1x128xf32, #tpu.memory_space<vmem>>, %arg1: memref<8x19xf32, #tpu.memory_space<vmem>>, %arg2: memref<1x3xf32, #tpu.memory_space<vmem>>) attributes {dimension_semantics = [], scalar_prefetch = 0 : i64, scratch_operands = 0 : i64, tpu.core_type = #tpu.core_type<tc>} {
    %c0 = arith.constant 0 : index
    %c0_0 = arith.constant 0 : index
    %0 = vector.load %arg0[%c0, %c0_0] : memref<1x128xf32, #tpu.memory_space<vmem>>, vector<1x128xf32>
    %1 = tpu.iota {dimensions = array<i32: 1>} : vector<1x128xi32>
    %2 = tpu.iota {dimensions = array<i32: 0>} : vector<8x128xi32>
    %3 = tpu.iota {dimensions = array<i32: 1>} : vector<8x128xi32>
    %4 = arith.cmpi eq, %2, %3 : vector<8x128xi32>
    %c0_1 = arith.constant 0 : index
    %c1 = arith.constant 1 : index
    %5 = vector.load %arg1[%c0_1, %c1] : memref<8x19xf32, #tpu.memory_space<vmem>>, vector<8x1xf32>
    %6 = vector.broadcast %5 : vector<8x1xf32> to vector<8x128xf32>
    %7 = vector.broadcast %0 : vector<1x128xf32> to vector<8x128xf32>
    %8 = arith.mulf %6, %7 : vector<8x128xf32>
    %c1_i32 = arith.constant 1 : i32
    %9 = tpu.dynamic_rotate %0 by %c1_i32 dim 1 : vector<1x128xf32>, i32 -> vector<1x128xf32>
    %c0_2 = arith.constant 0 : index
    %c0_3 = arith.constant 0 : index
    %10 = vector.load %arg1[%c0_2, %c0_3] : memref<8x19xf32, #tpu.memory_space<vmem>>, vector<8x1xf32>
    %11 = vector.broadcast %10 : vector<8x1xf32> to vector<8x128xf32>
    %12 = vector.broadcast %9 : vector<1x128xf32> to vector<8x128xf32>
    %13 = arith.mulf %11, %12 : vector<8x128xf32>
    %14 = arith.addf %8, %13 : vector<8x128xf32>
    %c127_i32 = arith.constant 127 : i32
    %15 = tpu.dynamic_rotate %0 by %c127_i32 dim 1 : vector<1x128xf32>, i32 -> vector<1x128xf32>
    %c0_4 = arith.constant 0 : index
    %c2 = arith.constant 2 : index
    %16 = vector.load %arg1[%c0_4, %c2] : memref<8x19xf32, #tpu.memory_space<vmem>>, vector<8x1xf32>
    %17 = vector.broadcast %16 : vector<8x1xf32> to vector<8x128xf32>
    %18 = vector.broadcast %15 : vector<1x128xf32> to vector<8x128xf32>
    %19 = arith.mulf %17, %18 : vector<8x128xf32>
    %20 = arith.addf %14, %19 : vector<8x128xf32>
    %c0_5 = arith.constant 0 : index
    %c3 = arith.constant 3 : index
    %21 = vector.load %arg1[%c0_5, %c3] : memref<8x19xf32, #tpu.memory_space<vmem>>, vector<8x1xf32>
    %22 = vector.broadcast %21 : vector<8x1xf32> to vector<8x128xf32>
    %23 = arith.addf %20, %22 : vector<8x128xf32>
    %cst = arith.constant 0.000000e+00 : f32
    %24 = vector.broadcast %cst : f32 to vector<8x128xf32>
    %25 = arith.maximumf %23, %24 : vector<8x128xf32>
    %c16_i32 = arith.constant 16 : i32
    %26 = vector.broadcast %c16_i32 : i32 to vector<1x128xi32>
    %27 = arith.cmpi slt, %1, %26 : vector<1x128xi32>
    %cst_6 = arith.constant 0.000000e+00 : f32
    %28 = vector.shape_cast %27 : vector<1x128xi1> to vector<1x128xi1>
    %29 = vector.broadcast %28 : vector<1x128xi1> to vector<8x128xi1>
    %30 = vector.broadcast %cst_6 : f32 to vector<8x128xf32>
    %31 = arith.select %29, %25, %30 : vector<8x128xi1>, vector<8x128xf32>
    %cst_7 = arith.constant dense<0xFF800000> : vector<8xf32>
    %32 = vector.multi_reduction <maximumf>, %31, %cst_7 [1] : vector<8x128xf32> to vector<8xf32>
    %33 = vector.shape_cast %32 : vector<8xf32> to vector<8x1xf32>
    %cst_8 = arith.constant 0.000000e+00 : f32
    %34 = vector.shape_cast %33 : vector<8x1xf32> to vector<8x1xf32>
    %35 = vector.broadcast %34 : vector<8x1xf32> to vector<8x128xf32>
    %36 = vector.broadcast %cst_8 : f32 to vector<8x128xf32>
    %37 = arith.select %4, %35, %36 : vector<8x128xi1>, vector<8x128xf32>
    %cst_9 = arith.constant dense<0.000000e+00> : vector<128xf32>
    %38 = vector.multi_reduction <add>, %37, %cst_9 [0] : vector<8x128xf32> to vector<128xf32>
    %39 = vector.shape_cast %38 : vector<128xf32> to vector<1x128xf32>
    %c0_10 = arith.constant 0 : index
    %c6 = arith.constant 6 : index
    %40 = vector.load %arg1[%c0_10, %c6] : memref<8x19xf32, #tpu.memory_space<vmem>>, vector<8x1xf32>
    %41 = vector.broadcast %40 : vector<8x1xf32> to vector<8x128xf32>
    %42 = vector.broadcast %39 : vector<1x128xf32> to vector<8x128xf32>
    %43 = arith.mulf %41, %42 : vector<8x128xf32>
    %c2_i32 = arith.constant 2 : i32
    %44 = tpu.dynamic_rotate %39 by %c2_i32 dim 1 : vector<1x128xf32>, i32 -> vector<1x128xf32>
    %c0_11 = arith.constant 0 : index
    %c4 = arith.constant 4 : index
    %45 = vector.load %arg1[%c0_11, %c4] : memref<8x19xf32, #tpu.memory_space<vmem>>, vector<8x1xf32>
    %46 = vector.broadcast %45 : vector<8x1xf32> to vector<8x128xf32>
    %47 = vector.broadcast %44 : vector<1x128xf32> to vector<8x128xf32>
    %48 = arith.mulf %46, %47 : vector<8x128xf32>
    %49 = arith.addf %43, %48 : vector<8x128xf32>
    %c1_i32_12 = arith.constant 1 : i32
    %50 = tpu.dynamic_rotate %39 by %c1_i32_12 dim 1 : vector<1x128xf32>, i32 -> vector<1x128xf32>
    %c0_13 = arith.constant 0 : index
    %c5 = arith.constant 5 : index
    %51 = vector.load %arg1[%c0_13, %c5] : memref<8x19xf32, #tpu.memory_space<vmem>>, vector<8x1xf32>
    %52 = vector.broadcast %51 : vector<8x1xf32> to vector<8x128xf32>
    %53 = vector.broadcast %50 : vector<1x128xf32> to vector<8x128xf32>
    %54 = arith.mulf %52, %53 : vector<8x128xf32>
    %55 = arith.addf %49, %54 : vector<8x128xf32>
    %c127_i32_14 = arith.constant 127 : i32
    %56 = tpu.dynamic_rotate %39 by %c127_i32_14 dim 1 : vector<1x128xf32>, i32 -> vector<1x128xf32>
    %c0_15 = arith.constant 0 : index
    %c7 = arith.constant 7 : index
    %57 = vector.load %arg1[%c0_15, %c7] : memref<8x19xf32, #tpu.memory_space<vmem>>, vector<8x1xf32>
    %58 = vector.broadcast %57 : vector<8x1xf32> to vector<8x128xf32>
    %59 = vector.broadcast %56 : vector<1x128xf32> to vector<8x128xf32>
    %60 = arith.mulf %58, %59 : vector<8x128xf32>
    %61 = arith.addf %55, %60 : vector<8x128xf32>
    %c126_i32 = arith.constant 126 : i32
    %62 = tpu.dynamic_rotate %39 by %c126_i32 dim 1 : vector<1x128xf32>, i32 -> vector<1x128xf32>
    %c0_16 = arith.constant 0 : index
    %c8 = arith.constant 8 : index
    %63 = vector.load %arg1[%c0_16, %c8] : memref<8x19xf32, #tpu.memory_space<vmem>>, vector<8x1xf32>
    %64 = vector.broadcast %63 : vector<8x1xf32> to vector<8x128xf32>
    %65 = vector.broadcast %62 : vector<1x128xf32> to vector<8x128xf32>
    %66 = arith.mulf %64, %65 : vector<8x128xf32>
    %67 = arith.addf %61, %66 : vector<8x128xf32>
    %c0_17 = arith.constant 0 : index
    %c9 = arith.constant 9 : index
    %68 = vector.load %arg1[%c0_17, %c9] : memref<8x19xf32, #tpu.memory_space<vmem>>, vector<8x1xf32>
    %69 = vector.broadcast %68 : vector<8x1xf32> to vector<8x128xf32>
    %70 = arith.addf %67, %69 : vector<8x128xf32>
    %cst_18 = arith.constant 0.000000e+00 : f32
    %71 = vector.broadcast %cst_18 : f32 to vector<8x128xf32>
    %72 = arith.maximumf %70, %71 : vector<8x128xf32>
    %c8_i32 = arith.constant 8 : i32
    %73 = vector.broadcast %c8_i32 : i32 to vector<1x128xi32>
    %74 = arith.cmpi slt, %1, %73 : vector<1x128xi32>
    %cst_19 = arith.constant 0.000000e+00 : f32
    %75 = vector.shape_cast %74 : vector<1x128xi1> to vector<1x128xi1>
    %76 = vector.broadcast %75 : vector<1x128xi1> to vector<8x128xi1>
    %77 = vector.broadcast %cst_19 : f32 to vector<8x128xf32>
    %78 = arith.select %76, %72, %77 : vector<8x128xi1>, vector<8x128xf32>
    %cst_20 = arith.constant dense<0xFF800000> : vector<8xf32>
    %79 = vector.multi_reduction <maximumf>, %78, %cst_20 [1] : vector<8x128xf32> to vector<8xf32>
    %80 = vector.shape_cast %79 : vector<8xf32> to vector<8x1xf32>
    %c0_21 = arith.constant 0 : index
    %c10 = arith.constant 10 : index
    %81 = vector.load %arg1[%c0_21, %c10] : memref<8x19xf32, #tpu.memory_space<vmem>>, vector<8x3xf32>
    %82 = vector.broadcast %33 : vector<8x1xf32> to vector<8x3xf32>
    %83 = arith.mulf %82, %81 : vector<8x3xf32>
    %c0_22 = arith.constant 0 : index
    %c13 = arith.constant 13 : index
    %84 = vector.load %arg1[%c0_22, %c13] : memref<8x19xf32, #tpu.memory_space<vmem>>, vector<8x3xf32>
    %85 = vector.broadcast %80 : vector<8x1xf32> to vector<8x3xf32>
    %86 = arith.mulf %85, %84 : vector<8x3xf32>
    %87 = arith.addf %83, %86 : vector<8x3xf32>
    %cst_23 = arith.constant dense<0.000000e+00> : vector<3xf32>
    %88 = vector.multi_reduction <add>, %87, %cst_23 [0] : vector<8x3xf32> to vector<3xf32>
    %89 = vector.shape_cast %88 : vector<3xf32> to vector<1x3xf32>
    %c0_24 = arith.constant 0 : index
    %c16 = arith.constant 16 : index
    %90 = vector.load %arg1[%c0_24, %c16] : memref<8x19xf32, #tpu.memory_space<vmem>>, vector<1x3xf32>
    %91 = arith.addf %89, %90 : vector<1x3xf32>
    %c0_25 = arith.constant 0 : index
    %c0_26 = arith.constant 0 : index
    %92 = vector.load %arg2[%c0_25, %c0_26] : memref<1x3xf32, #tpu.memory_space<vmem>>, vector<1x3xf32>
    tpu.vector_store %arg2[%c0_25, %c0_26], %91 {strides = array<i32>} : memref<1x3xf32, #tpu.memory_space<vmem>>, vector<1x3xf32>,
    return
  }
}

</mosaic_0001>

<bundles_post_ra>
// kernel: cnn_forward.1
= control target key start
LH: loop header
LB: loop body
LE: loop exit
PB: predicated region body
PF: predicated region fallthrough
CT: control target
= control target key end

     0   :  { %7 = vsyncpa [#allocation3], 0  ;;  %s397_s0 = inlined_call_operand.hbm [shape: f32[1,128], index: 0, kind: input, shape index: {}]   ;;  %s398_s1 = inlined_call_operand.hbm [shape: f32[8,19], index: 1, kind: input, shape index: {}]   ;;  %s399_s2 = inlined_call_operand.hbm [shape: f32[1,3], index: 2, kind: output, shape index: {}]  }
   0x1   :  { %8 = vsyncpa [#allocation6], 0 }
   0x2   :  { %9 = vsyncpa [#allocation4], 0  ;;  %s308_s9 = smov [#allocation2]   ;;  %s309_s11 = smov [#allocation5]  }
   0x3   :  { %s16_s10 = sshll.u32 %s308_s9, 4  ;;  %s26_s12 = sshll.u32 %s309_s11, 4  ;;  %s17_s10 = int_to_ptr.vmem [resolvable:$true] %s16_s10  ;;  %s27_s12 = int_to_ptr.vmem [resolvable:$true] %s26_s12 }
   0x4   :  { %s236_s15 = scalar_lea.hbm %s397_s0, 16 }
   0x5   :  { %p237_p0 = scmp.ne.s32.totalorder %s397_s0, %s236_s15  ;;  %p240_p1 = scmp.lt.u32.totalorder %s236_s15, %s397_s0 }
   0x7   :  { %p242_p2 = pnand %p240_p1, %p237_p0 }
   0x9   :  { %245 = shalt.err (!%p242_p2)
}
   0xa   :  { %s246_s20 = scalar_lea.vmem %s17_s10, 16  ;;  %s250_s21 = scalar_lea.vmem %s17_s10, 32 }
   0xb   :  { %p247_p3 = scmp.ne.s32.totalorder %s17_s10, %s246_s20  ;;  %p251_p4 = scmp.lt.s32.totalorder %s17_s10, %s17_s10 }
   0xc   :  { %p252_p5 = scmp.lt.s32.totalorder %s250_s21, %s246_s20 }
   0xe   :  { %p253_p6 = por %p252_p5, %p251_p4 }
  0x10   :  { %p254_p7 = pnand %p253_p6, %p247_p3 }
  0x12   :  { %257 = shalt.err (!%p254_p7)
}
  0x13   :  { %19 = dma.hbm_to_vmem [thread:$0]  %s397_s0, 16, %s17_s10, [#allocation3]  }
  0x14   :  { %s258_s26 = scalar_lea.hbm %s398_s1, 128 }
  0x15   :  { %p259_p8 = scmp.ne.s32.totalorder %s398_s1, %s258_s26  ;;  %p262_p9 = scmp.lt.u32.totalorder %s258_s26, %s398_s1 }
  0x17   :  { %p264_p10 = pnand %p262_p9, %p259_p8 }
  0x19   :  { %267 = shalt.err (!%p264_p10)
}
  0x1a   :  { %s268_s3 = scalar_lea.vmem %s27_s12, 128  ;;  %p273_p12 = scmp.lt.s32.totalorder %s27_s12, %s27_s12 }
  0x1b   :  { %p269_p11 = scmp.ne.s32.totalorder %s27_s12, %s268_s3  ;;  %p274_p13 = scmp.lt.s32.totalorder %s268_s3, %s268_s3 }
  0x1d   :  { %p275_p0 = por %p274_p13, %p273_p12 }
  0x1f   :  { %p276_p1 = pnand %p275_p0, %p269_p11 }
  0x21   :  { %279 = shalt.err (!%p276_p1)
}
  0x22   :  { %29 = dma.hbm_to_vmem [thread:$0]  %s398_s1, 128, %s27_s12, [#allocation6]  }
  0x23   :  { %302 = dma.done.wait [#allocation3], 16  }
  0x24   :  { %303 = vsyncadd [#allocation3], 4294967280 }
  0x25   :  { %304 = dma.done.wait [#allocation6], 128  }
  0x26   :  { %305 = vsyncadd [#allocation6], 4294967168  ;;  %v310_v0 = vmov 2   ;;  %v311_v1 = vmov 1   ;;  %v367_v2 = vld [vmem:[#allocation5] sm:$0xff]  ;;  %v312_v4 = vmov 0   ;;  %v37_v11 = vlaneseq }
  0x27   :  { %228 = vset.pattern.permute.xlu1 %v310_v0  ;;  %226 = vset.pattern.permute.xlu0 %v311_v1  ;;  %v36_v3 = vld [vmem:[#allocation2] sm:$0x1]  ;;  %s313_s5 = smov 1   ;;  %v314_v5 = vmov 3   ;;  %s315_s1 = smov 127   ;;  %v316_v6 = vmov 6  }
  0x28   :  { %70 = vperm.xlu1 %228, %v367_v2   ;;  %45 = vperm.xlu0 %226, %v367_v2   ;;  %v317_v7 = vmov 8   ;;  %v318_v8 = vmov 4   ;;  %v319_v9 = vmov 5   ;;  %v320_v10 = vmov 7   ;;  %s322_s6 = smov 126   ;;  %s323_s7 = smov 2  }
  0x29   :  { %v40_v12 = vshrl.u32 %v37_v11, 7  ;;  %v38_v27 = vand.u32 127, %v37_v11  ;;  %v321_v32 = vmov 9   ;;  %s324_s8 = smov 125   ;;  %s325_s9 = smov 122   ;;  %vm170_vm3 = vcmask 105552  }
  0x2a   :  { %s326_s10 = smov 118   ;;  %s327_s11 = smov [#allocation7]   ;;  %vm188_vm4 = vcmask 16384  }
  0x2b   :  { %v51_v15 = vsub.s32 0, %v40_v12  ;;  %vm85_vm0 = vcmp.lt.s32.totalorder %v38_v27, 16  ;;  %vm41_vm1 = vcmp.eq.s32.totalorder %v40_v12, %v38_v27  ;;  %vm157_vm2 = vcmp.lt.s32.totalorder %v38_v27, 8  ;;  %s196_s12 = sshll.u32 %s327_s11, 4  ;;  %s197_s12 = int_to_ptr.vmem [resolvable:$true] %s196_s12 }
  0x2c   :  { %227 = vset.pattern.permute.xlu0 %v312_v4  ;;  %55 = vrot.lane.b32.xlu1 %v36_v3, %s313_s5  ;;  %s280_s13 = scalar_lea.vmem %s197_s12, 16  ;;  %s284_s14 = scalar_lea.vmem %s197_s12, 32 }
  0x2d   :  { %58 = vperm.xlu0 %227, %v367_v2   ;;  %229 = vset.pattern.permute.xlu1 %v314_v5  ;;  %v52_v19 = vrot.slane %v36_v3, %v51_v15  ;;  %p281_p2 = scmp.ne.s32.totalorder %s197_s12, %s280_s13  ;;  %p285_p3 = scmp.lt.s32.totalorder %s197_s12, %s197_s12 }
  0x2e   :  { %p286_p4 = scmp.lt.s32.totalorder %s284_s14, %s280_s13 }
  0x30   :  { %80 = vperm.xlu1 %229, %v367_v2   ;;  %p287_p5 = por %p286_p4, %p285_p3 }
  0x31   :  { %67 = vrot.lane.b32.xlu0 %v36_v3, %s315_s1 }
  0x32   :  { %230 = vset.pattern.permute.xlu0 %v316_v6  ;;  %v178_v6 = vld [vmem:[#allocation5] sm:$0x1]  ;;  %p288_p6 = pnand %p287_p5, %p281_p2 }
  0x34   :  { %234 = vset.pattern.permute.xlu1 %v317_v7 }
  0x35   :  { %99 = vperm.xlu0 %230, %v367_v2  }
  0x39   :  { %231 = vset.pattern.permute.xlu0 %v318_v8 }
  0x3a   :  { %106 = vperm.xlu0 %231, %v367_v2  }
  0x3e   :  { %232 = vset.pattern.permute.xlu0 %v319_v9 }
  0x3f   :  { %118 = vperm.xlu0 %232, %v367_v2  }
  0x43   :  { %233 = vset.pattern.permute.xlu0 %v320_v10 }
  0x44   :  { %130 = vperm.xlu0 %233, %v367_v2  }
  0x48   :  { %235 = vset.pattern.permute.xlu0 %v321_v32 }
  0xa7   :  { %v71_v13 = vpop.permute.xlu1 %70  ;;  %v46_v14 = vpop.permute.xlu0 %45 }
  0xa8   :  { %v54_v22 = vmul.f32 %v52_v19, %v46_v14 }
  0xab   :  { %v56_v16 = vpop.permute.xlu1 %55 }
  0xac   :  { %v64_v17 = vrot.slane %v56_v16, %v51_v15  ;;  %v59_v18 = vpop.permute.xlu0 %58 }
  0xae   :  { %v65_v20 = vmul.f32 %v64_v17, %v59_v18 }
  0xaf   :  { %v81_v26 = vpop.permute.xlu1 %80 }
  0xb0   :  { %v68_v21 = vpop.permute.xlu0 %67  ;;  %v66_v24 = vadd.f32 %v65_v20, %v54_v22 }
  0xb1   :  { %v76_v23 = vrot.slane %v68_v21, %v51_v15 }
  0xb3   :  { %v77_v25 = vmul.f32 %v76_v23, %v71_v13 }
  0xb4   :  { %v100_v41 = vpop.permute.xlu0 %99 }
  0xb5   :  { %v78_v28 = vadd.f32 %v77_v25, %v66_v24 }
  0xb7   :  { %v83_v29 = vadd.f32 %v81_v26, %v78_v28 }
  0xb9   :  { %v84_v30 = vmax.f32 %v83_v29, 0.0  ;;  %v107_v42 = vpop.permute.xlu0 %106 }
  0xbb   :  { %v88_v31 = vsel %vm85_vm0, %v84_v30, 0.0 }
  0xbc   :  { %89 = vmax.xlane.f32.xlu1 %v88_v31 }
  0xbe   :  { %v119_v43 = vpop.permute.xlu0 %118 }
  0xc3   :  { %v131_v44 = vpop.permute.xlu0 %130 }
  0xcd   :  { %142 = vperm.xlu1 %234, %v367_v2  }
 0x149   :  { %v90_v33 = vpop.xlane.xlu1 %89 }
 0x14a   :  { %v91_v34 = vsel %vm41_vm1, %v90_v33, 0.0  ;;  %v163_v7 = vmul.f32 %v90_v33, %v367_v2 }
 0x14b   :  { %v92_v35 = vrot.slane %v91_v34, 4 }
 0x14d   :  { %v93_v36 = vadd.f32 %v92_v35, %v91_v34  ;;  %v143_v48 = vpop.permute.xlu1 %142 }
 0x14f   :  { %v94_v37 = vrot.slane %v93_v36, 2 }
 0x151   :  { %v95_v38 = vadd.f32 %v94_v37, %v93_v36 }
 0x153   :  { %v96_v39 = vrot.slane %v95_v38, 1 }
 0x155   :  { %v97_v40 = vadd.f32 %v96_v39, %v95_v38 }
 0x157   :  { %139 = vrot.lane.b32.xlu1 %v97_v40, %s322_s6  ;;  %103 = vrot.lane.b32.xlu0 %v97_v40, %s323_s7  ;;  %v102_v53 = vmul.f32 %v100_v41, %v97_v40 }
 0x15b   :  { %115 = vrot.lane.b32.xlu0 %v97_v40, %s313_s5 }
 0x15f   :  { %127 = vrot.lane.b32.xlu0 %v97_v40, %s315_s1 }
 0x163   :  { %152 = vperm.xlu0 %235, %v367_v2  }
 0x1c9   :  { %v104_v45 = vpop.permute.xlu0 %103  ;;  %v140_v55 = vpop.permute.xlu1 %139 }
 0x1ca   :  { %v112_v47 = vrot.slane %v104_v45, %v51_v15  ;;  %v148_v58 = vrot.slane %v140_v55, %v51_v15 }
 0x1cc   :  { %v113_v51 = vmul.f32 %v112_v47, %v107_v42  ;;  %v149_v61 = vmul.f32 %v148_v58, %v143_v48 }
 0x1cd   :  { %v116_v46 = vpop.permute.xlu0 %115 }
 0x1ce   :  { %v124_v50 = vrot.slane %v116_v46, %v51_v15  ;;  %v114_v56 = vadd.f32 %v113_v51, %v102_v53 }
 0x1d0   :  { %v125_v54 = vmul.f32 %v124_v50, %v119_v43 }
 0x1d1   :  { %v128_v49 = vpop.permute.xlu0 %127 }
 0x1d2   :  { %v136_v52 = vrot.slane %v128_v49, %v51_v15  ;;  %v126_v59 = vadd.f32 %v125_v54, %v114_v56 }
 0x1d4   :  { %v137_v57 = vmul.f32 %v136_v52, %v131_v44 }
 0x1d6   :  { %v138_v60 = vadd.f32 %v137_v57, %v126_v59 }
 0x1d8   :  { %v150_v62 = vadd.f32 %v149_v61, %v138_v60 }
 0x1e2   :  { %v153_v63 = vpop.permute.xlu0 %152 }
 0x1e3   :  { %v155_v0 = vadd.f32 %v153_v63, %v150_v62 }
 0x1e5   :  { %v156_v1 = vmax.f32 %v155_v0, 0.0 }
 0x1e7   :  { %v160_v3 = vsel %vm157_vm2, %v156_v1, 0.0 }
 0x1e8   :  { %161 = vmax.xlane.f32.xlu0 %v160_v3 }
 0x275   :  { %v162_v4 = vpop.xlane.xlu0 %161 }
 0x276   :  { %v164_v5 = vmul.f32 %v162_v4, %v367_v2 }
 0x278   :  { %166 = vrot.lane.b32.xlu1 %v164_v5, %s324_s8 }
 0x27c   :  { %180 = vrot.lane.b32.xlu1 %v178_v6, %s325_s9 }
 0x2ea   :  { %v167_v8 = vpop.permute.xlu1 %166 }
 0x2eb   :  { %v169_v9 = vadd.f32 %v167_v8, %v163_v7 }
 0x2ed   :  { %v171_v10 = vsel %vm170_vm3, %v169_v9, 0.0 }
 0x2ee   :  { %v172_v11 = vrot.slane %v171_v10, 4  ;;  %v181_v16 = vpop.permute.xlu1 %180 }
 0x2f0   :  { %v173_v12 = vadd.f32 %v172_v11, %v171_v10 }
 0x2f2   :  { %v174_v13 = vrot.slane %v173_v12, 2 }
 0x2f4   :  { %v175_v14 = vadd.f32 %v174_v13, %v173_v12 }
 0x2f6   :  { %v176_v15 = vrot.slane %v175_v14, 1 }
 0x2f8   :  { %v177_v17 = vadd.f32 %v176_v15, %v175_v14 }
 0x2fa   :  { %v183_v18 = vadd.f32 %v181_v16, %v177_v17 }
 0x2fc   :  { %185 = vrot.lane.b32.xlu1 %v183_v18, %s326_s10 }
 0x36e   :  { %v186_v19 = vpop.permute.xlu1 %185 }
 0x36f   :  { %189 = vst.msk [vmem:[#allocation7] sm:$0x1] %vm188_vm4, %v186_v19 }
 0x370   :  { %291 = shalt.err (!%p288_p6)
}
 0x371   :  { %s292_s17 = scalar_lea.hbm %s399_s2, 16 }
 0x372   :  { %p293_p7 = scmp.ne.s32.totalorder %s399_s2, %s292_s17  ;;  %p296_p8 = scmp.lt.u32.totalorder %s292_s17, %s399_s2 }
 0x374   :  { %p298_p9 = pnand %p296_p8, %p293_p7 }
 0x376   :  { %301 = shalt.err (!%p298_p9)
}
 0x377   :  { %199 = dma.vmem_to_hbm [thread:$0]  %s197_s12, 16, %s399_s2, [#allocation4]  }
 0x378   :  { %306 = dma.done.wait [#allocation4], 16  }
 0x379   :  { %307 = vsyncadd [#allocation4], 4294967280 }
 0x37a   :  { %203 = vsyncpa [#allocation3], 1 }
 0x37b   :  { %204 = vsyncpa [#allocation6], 1 }
 0x37c   :  { %205 = vsyncpa [#allocation4], 1 }

</bundles_post_ra>
